<compile_context>
chip_gen: v7x
topology: tpu7x:2x2x1
jax: 0.10.0
libtpu: 0.0.40
codegen_flags: <defaults>
</compile_context>

<pallas_src>
import jax
import jax.numpy as jnp
from jax.experimental import pallas as pl
from jax.experimental.pallas import tpu as pltpu


def _sbg_inject_kernel(x_ref, w_ref, b_ref, out_ref):
    x = x_ref[...]                                   # (B, D)   f32
    w = w_ref[...]                                   # (D, 2C)  f32, [K(sublane), N(lane)]
    b = b_ref[...]                                   # (1, 2C)  f32

    # Single fused MXU matmul for both injected nets; RHS is already [K, N],
    # so no in-kernel transpose / layout change is required.
    logits = jnp.dot(x, w, preferred_element_type=jnp.float32) + b   # (B, 2C)

    C = out_ref.shape[1]
    l1 = logits[:, :C]                               # net1 logits (B, C)
    l2 = logits[:, C:]                               # net2 logits (B, C)

    def _softmax(z):
        z = z - jnp.max(z, axis=-1, keepdims=True)
        e = jnp.exp(z)
        return e * pl.reciprocal(jnp.sum(e, axis=-1, keepdims=True), approx=False)

    y1 = _softmax(l1)
    y2 = _softmax(l2)

    # y2[:, 0] += 1.5 * y1[:, 1], folded into a single full-tile store:
    # the injected value is broadcast from y1[:, 1] and masked to lane 0.
    col = jax.lax.broadcasted_iota(jnp.int32, y2.shape, dimension=1)
    inj = jnp.where(col == 0, 1.5 * y1[:, 1:2], 0.0)
    out_ref[...] = y2 + inj


def prepare_params(w1, b1, w2, b2):
    """One-time weight prep: fuse the two linear layers into MXU-friendly tensors.

    w1, w2: [D, C] (input-major); b1, b2: [C].
    Returns w_cat: [D, 2C]  (contraction dim on sublanes, output dim on lanes),
            b_cat: [1, 2C].
    """
    w_cat = jnp.concatenate([w1, w2], axis=1).astype(jnp.float32)          # (D, 2C)
    b_cat = jnp.concatenate([b1, b2]).reshape(1, -1).astype(jnp.float32)   # (1, 2C)
    return w_cat, b_cat


@jax.jit
def sbg_inject_net(x_nchw, w_cat, b_cat):
    """x_nchw: [B, C, H, W] f32; w_cat: [D, 2*num_classes]; b_cat: [1, 2*num_classes].

    Returns [B, num_classes] f32.
    """
    B = x_nchw.shape[0]
    D = x_nchw.shape[1] * x_nchw.shape[2] * x_nchw.shape[3]
    two_c = w_cat.shape[1]
    num_classes = two_c // 2
    x_flat = x_nchw.reshape(B, D)

    # Advisory cost so XLA can overlap neighbouring ops around the custom call.
    cost = pl.CostEstimate(
        flops=2 * B * D * two_c,
        transcendentals=B * two_c,
        bytes_accessed=4 * (B * D + D * two_c + two_c + B * num_classes),
    )

    # Whole problem fits trivially in VMEM (<1 MiB even with lane padding):
    # grid-less call, no software pipeline, all operands resident in VMEM.
    # TODO(synk): if B or D is ever scaled up, add a batch-parallel grid
    # (v7x 2-TC) and a K-tiled accumulator; pointless at these shapes.
    return pl.pallas_call(
        _sbg_inject_kernel,
        out_shape=jax.ShapeDtypeStruct((B, num_classes), jnp.float32),
        in_specs=[
            pl.BlockSpec(memory_space=pltpu.MemorySpace.VMEM),   # x      (B, D)
            pl.BlockSpec(memory_space=pltpu.MemorySpace.VMEM),   # w_cat  (D, 2C)
            pl.BlockSpec(memory_space=pltpu.MemorySpace.VMEM),   # b_cat  (1, 2C)
        ],
        out_specs=pl.BlockSpec(memory_space=pltpu.MemorySpace.VMEM),
        cost_estimate=cost,
    )(x_flat, w_cat, b_cat)


def _reference(x_nchw, w1, b1, w2, b2):
    B = x_nchw.shape[0]
    x = x_nchw.reshape(B, -1)
    l1 = x @ w1 + b1
    l2 = x @ w2 + b2
    y1 = jax.nn.softmax(l1, axis=1)
    y2 = jax.nn.softmax(l2, axis=1)
    y2 = y2.at[:, 0].set(1.5 * y1[:, 1] + y2[:, 0])
    return y2


if __name__ == "__main__":
    # Small shapes consistent with the module: batch=2, channels=4, spatial=16,
    # flattened feature dim D = 4*16*16 = 1024, num_classes = 8.
    B, Cin, H, W = 2, 4, 16, 16
    D = Cin * H * W
    NUM_CLASSES = 8

    key = jax.random.PRNGKey(0)
    kx, kw1, kb1, kw2, kb2 = jax.random.split(key, 5)

    x = jax.random.normal(kx, (B, Cin, H, W), dtype=jnp.float32)
    # Deterministic synthetic parameters for the two injected nets.
    w1 = 0.05 * jax.random.normal(kw1, (D, NUM_CLASSES), dtype=jnp.float32)
    b1 = 0.01 * jax.random.normal(kb1, (NUM_CLASSES,), dtype=jnp.float32)
    w2 = 0.05 * jax.random.normal(kw2, (D, NUM_CLASSES), dtype=jnp.float32)
    b2 = 0.01 * jax.random.normal(kb2, (NUM_CLASSES,), dtype=jnp.float32)

    # One-time fused parameter prep (outside the per-call hot path).
    w_cat, b_cat = prepare_params(w1, b1, w2, b2)
    w_cat = jax.block_until_ready(w_cat)
    b_cat = jax.block_until_ready(b_cat)

    out = sbg_inject_net(x, w_cat, b_cat)
    out = jax.block_until_ready(out)

    ref = _reference(x, w1, b1, w2, b2)
    assert out.shape == (B, NUM_CLASSES)
    assert jnp.allclose(out, ref, atol=1e-5, rtol=1e-5), (
        f"mismatch: max abs err {jnp.max(jnp.abs(out - ref))}"
    )
    print("KERNEL_OK")
</pallas_src>

<mosaic_0001>
module attributes {stable_mosaic.version = 11 : i64} {
  func.func @_sbg_inject_kernel(%arg0: memref<2x1024xf32, #tpu.memory_space<vmem>>, %arg1: memref<1024x16xf32, #tpu.memory_space<vmem>>, %arg2: memref<1x16xf32, #tpu.memory_space<vmem>>, %arg3: memref<2x8xf32, #tpu.memory_space<vmem>>) attributes {dimension_semantics = [], scalar_prefetch = 0 : i64, scratch_operands = 0 : i64, tpu.core_type = #tpu.core_type<tc>} {
    %c0 = arith.constant 0 : index
    %c0_0 = arith.constant 0 : index
    %0 = vector.load %arg0[%c0, %c0_0] : memref<2x1024xf32, #tpu.memory_space<vmem>>, vector<2x1024xf32>
    %c0_1 = arith.constant 0 : index
    %c0_2 = arith.constant 0 : index
    %1 = vector.load %arg1[%c0_1, %c0_2] : memref<1024x16xf32, #tpu.memory_space<vmem>>, vector<1024x16xf32>
    %c0_3 = arith.constant 0 : index
    %c0_4 = arith.constant 0 : index
    %2 = vector.load %arg2[%c0_3, %c0_4] : memref<1x16xf32, #tpu.memory_space<vmem>>, vector<1x16xf32>
    %cst = arith.constant dense<0.000000e+00> : vector<2x16xf32>
    %3 = tpu.matmul %0, %1, %cst {dimension_numbers = #tpu.dot_dimension_numbers<[1], [0], [0], [1], [0, 0, 1, 1], [], []>} : vector<2x1024xf32>, vector<1024x16xf32>, vector<2x16xf32> -> vector<2x16xf32>
    %4 = vector.broadcast %2 : vector<1x16xf32> to vector<2x16xf32>
    %5 = arith.addf %3, %4 : vector<2x16xf32>
    %6 = vector.extract_strided_slice %5 {offsets = [0, 0], sizes = [2, 8], strides = [1, 1]} : vector<2x16xf32> to vector<2x8xf32>
    %7 = vector.extract_strided_slice %5 {offsets = [0, 8], sizes = [2, 8], strides = [1, 1]} : vector<2x16xf32> to vector<2x8xf32>
    %cst_5 = arith.constant dense<0xFF800000> : vector<2xf32>
    %8 = vector.multi_reduction <maximumf>, %6, %cst_5 [1] : vector<2x8xf32> to vector<2xf32>
    %9 = vector.shape_cast %8 : vector<2xf32> to vector<2x1xf32>
    %10 = vector.broadcast %9 : vector<2x1xf32> to vector<2x8xf32>
    %11 = arith.subf %6, %10 : vector<2x8xf32>
    %12 = math.exp %11 : vector<2x8xf32>
    %cst_6 = arith.constant dense<0.000000e+00> : vector<2xf32>
    %13 = vector.multi_reduction <add>, %12, %cst_6 [1] : vector<2x8xf32> to vector<2xf32>
    %14 = vector.shape_cast %13 : vector<2xf32> to vector<2x1xf32>
    %15 = tpu.reciprocal %14 : vector<2x1xf32> -> vector<2x1xf32>
    %16 = vector.broadcast %15 : vector<2x1xf32> to vector<2x8xf32>
    %17 = arith.mulf %12, %16 : vector<2x8xf32>
    %cst_7 = arith.constant dense<0xFF800000> : vector<2xf32>
    %18 = vector.multi_reduction <maximumf>, %7, %cst_7 [1] : vector<2x8xf32> to vector<2xf32>
    %19 = vector.shape_cast %18 : vector<2xf32> to vector<2x1xf32>
    %20 = vector.broadcast %19 : vector<2x1xf32> to vector<2x8xf32>
    %21 = arith.subf %7, %20 : vector<2x8xf32>
    %22 = math.exp %21 : vector<2x8xf32>
    %cst_8 = arith.constant dense<0.000000e+00> : vector<2xf32>
    %23 = vector.multi_reduction <add>, %22, %cst_8 [1] : vector<2x8xf32> to vector<2xf32>
    %24 = vector.shape_cast %23 : vector<2xf32> to vector<2x1xf32>
    %25 = tpu.reciprocal %24 : vector<2x1xf32> -> vector<2x1xf32>
    %26 = vector.broadcast %25 : vector<2x1xf32> to vector<2x8xf32>
    %27 = arith.mulf %22, %26 : vector<2x8xf32>
    %28 = tpu.iota {dimensions = array<i32: 1>} : vector<2x8xi32>
    %c0_i32 = arith.constant 0 : i32
    %29 = vector.broadcast %c0_i32 : i32 to vector<2x8xi32>
    %30 = arith.cmpi eq, %28, %29 : vector<2x8xi32>
    %31 = vector.extract_strided_slice %17 {offsets = [0, 1], sizes = [2, 1], strides = [1, 1]} : vector<2x8xf32> to vector<2x1xf32>
    %cst_9 = arith.constant 1.500000e+00 : f32
    %32 = vector.broadcast %cst_9 : f32 to vector<2x1xf32>
    %33 = arith.mulf %32, %31 : vector<2x1xf32>
    %cst_10 = arith.constant 0.000000e+00 : f32
    %34 = vector.shape_cast %33 : vector<2x1xf32> to vector<2x1xf32>
    %35 = vector.broadcast %34 : vector<2x1xf32> to vector<2x8xf32>
    %36 = vector.broadcast %cst_10 : f32 to vector<2x8xf32>
    %37 = arith.select %30, %35, %36 : vector<2x8xi1>, vector<2x8xf32>
    %38 = arith.addf %27, %37 : vector<2x8xf32>
    %c0_11 = arith.constant 0 : index
    %c0_12 = arith.constant 0 : index
    %39 = vector.load %arg3[%c0_11, %c0_12] : memref<2x8xf32, #tpu.memory_space<vmem>>, vector<2x8xf32>
    tpu.vector_store %arg3[%c0_11, %c0_12], %38 {strides = array<i32>} : memref<2x8xf32, #tpu.memory_space<vmem>>, vector<2x8xf32>,
    return
  }
}

</mosaic_0001>

<bundles_post_ra>
// kernel: sbg_inject_net.1
= control target key start
LH: loop header
LB: loop body
LE: loop exit
PB: predicated region body
PF: predicated region fallthrough
CT: control target
= control target key end

     0   :  { %v847_v47 = vmov 1983009808   ;;  %v158_v49 = vlaneseq  ;;  %s1294_s0 = inlined_call_operand.vmem [shape: f32[2,1024], index: 0, kind: input, shape index: {}]   ;;  %s1295_s1 = inlined_call_operand.vmem [shape: f32[1024,16], index: 1, kind: input, shape index: {}]   ;;  %s1296_s2 = inlined_call_operand.vmem [shape: f32[1,16], index: 2, kind: input, shape index: {}]   ;;  %s1297_s3 = inlined_call_operand.hbm [shape: f32[2,8], index: 3, kind: output, shape index: {}]  }
   0x1   :  { %v33_v0 = vld [vmem:[%s1295_s1 + $0x80] sm:$0xff]  ;;  %v34_v1 = vld [vmem:[%s1295_s1 + $0x88] sm:$0xff]  ;;  %v35_v11 = vld [vmem:[%s1295_s1 + $0x90] sm:$0xff]  ;;  %v156_v48 = vunpack.c.l.s4 %v847_v47 }
   0x2   :  { %v17_v2 = vld [vmem:[%s1295_s1] sm:$0xff]  ;;  %v679_v3 = vpack.c.bf16 %v34_v1, %v33_v0  ;;  %v18_v4 = vld [vmem:[%s1295_s1 + $0x8] sm:$0xff]  ;;  %v36_v13 = vld [vmem:[%s1295_s1 + $0x98] sm:$0xff]  ;;  %v159_v0 = vshrl.u32 %v158_v49, 7 }
   0x3   :  { %v65_v5 = vld [vmem:[%s1295_s1 + $0x180] sm:$0xff]  ;;  %v66_v6 = vld [vmem:[%s1295_s1 + $0x188] sm:$0xff]  ;;  %v681_v7 = vpack.c.bf16 %v18_v4, %v17_v2  ;;  %v19_v14 = vld [vmem:[%s1295_s1 + $0x10] sm:$0xff]  ;;  %v683_v16 = vpack.c.bf16 %v36_v13, %v35_v11  ;;  %v157_v63 = vunpack.c.0.s8 %v156_v48 }
   0x4   :  { %v711_v8 = vpack.c.bf16 %v66_v6, %v65_v5  ;;  %v49_v9 = vld [vmem:[%s1295_s1 + $0x100] sm:$0xff]  ;;  %v50_v10 = vld [vmem:[%s1295_s1 + $0x108] sm:$0xff]  ;;  %680 = vmatprep.subr.bf16.mxu0 %v679_v3  ;;  %v20_v15 = vld [vmem:[%s1295_s1 + $0x18] sm:$0xff] }
   0x5   :  { %v713_v12 = vpack.c.bf16 %v50_v10, %v49_v9  ;;  %682 = vmatpush3.bf16.msra.mxu0 %v681_v7  ;;  %v685_v17 = vpack.c.bf16 %v20_v15, %v19_v14  ;;  %v67_v18 = vld [vmem:[%s1295_s1 + $0x190] sm:$0xff]  ;;  %v68_v19 = vld [vmem:[%s1295_s1 + $0x198] sm:$0xff]  ;;  %v37_v23 = vld [vmem:[%s1295_s1 + $0xa0] sm:$0xff]  ;;  %v1023_v13 = vsub.s32 %v157_v63, %v159_v0 }
   0x6   :  { %712 = vmatprep.subr.bf16.mxu1 %v711_v8  ;;  %v51_v20 = vld [vmem:[%s1295_s1 + $0x110] sm:$0xff]  ;;  %v715_v21 = vpack.c.bf16 %v68_v19, %v67_v18  ;;  %v52_v22 = vld [vmem:[%s1295_s1 + $0x118] sm:$0xff]  ;;  %v38_v24 = vld [vmem:[%s1295_s1 + $0xa8] sm:$0xff]  ;;  %684 = vmatprep.subr.bf16.mxu0 %v683_v16 }
   0x7   :  { %714 = vmatpush3.bf16.msra.mxu1 %v713_v12  ;;  %v717_v25 = vpack.c.bf16 %v52_v22, %v51_v20  ;;  %v687_v26 = vpack.c.bf16 %v38_v24, %v37_v23  ;;  %v21_v27 = vld [vmem:[%s1295_s1 + $0x20] sm:$0xff]  ;;  %v22_v28 = vld [vmem:[%s1295_s1 + $0x28] sm:$0xff]  ;;  %v39_v35 = vld [vmem:[%s1295_s1 + $0xb0] sm:$0xff] }
   0x8   :  { %v69_v29 = vld [vmem:[%s1295_s1 + $0x1a0] sm:$0xff]  ;;  %716 = vmatprep.subr.bf16.mxu1 %v715_v21  ;;  %v70_v30 = vld [vmem:[%s1295_s1 + $0x1a8] sm:$0xff]  ;;  %v689_v33 = vpack.c.bf16 %v22_v28, %v21_v27  ;;  %v40_v36 = vld [vmem:[%s1295_s1 + $0xb8] sm:$0xff] }
   0x9   :  { %v53_v31 = vld [vmem:[%s1295_s1 + $0x120] sm:$0xff]  ;;  %v54_v32 = vld [vmem:[%s1295_s1 + $0x128] sm:$0xff]  ;;  %686 = vmatpush3.bf16.msra.mxu0 %v685_v17  ;;  %v719_v34 = vpack.c.bf16 %v70_v30, %v69_v29  ;;  %v23_v37 = vld [vmem:[%s1295_s1 + $0x30] sm:$0xff]  ;;  %v691_v39 = vpack.c.bf16 %v40_v36, %v39_v35 }
   0xa   :  { %688 = vmatprep.subr.bf16.mxu0 %v687_v26  ;;  %v721_v38 = vpack.c.bf16 %v54_v32, %v53_v31  ;;  %v24_v40 = vld [vmem:[%s1295_s1 + $0x38] sm:$0xff]  ;;  %v71_v41 = vld [vmem:[%s1295_s1 + $0x1b0] sm:$0xff]  ;;  %v41_v46 = vld [vmem:[%s1295_s1 + $0xc0] sm:$0xff] }
   0xb   :  { %718 = vmatpush3.bf16.msra.mxu1 %v717_v25  ;;  %v72_v42 = vld [vmem:[%s1295_s1 + $0x1b8] sm:$0xff]  ;;  %v55_v44 = vld [vmem:[%s1295_s1 + $0x130] sm:$0xff]  ;;  %v42_v50 = vld [vmem:[%s1295_s1 + $0xc8] sm:$0xff]  ;;  %v693_v51 = vpack.c.bf16 %v24_v40, %v23_v37 }
   0xc   :  { %720 = vmatprep.subr.bf16.mxu1 %v719_v34  ;;  %v723_v43 = vpack.c.bf16 %v72_v42, %v71_v41  ;;  %v56_v45 = vld [vmem:[%s1295_s1 + $0x138] sm:$0xff]  ;;  %v73_v52 = vld [vmem:[%s1295_s1 + $0x1c0] sm:$0xff]  ;;  %v74_v53 = vld [vmem:[%s1295_s1 + $0x1c8] sm:$0xff]  ;;  %v695_v55 = vpack.c.bf16 %v42_v50, %v41_v46 }
   0xd   :  { %690 = vmatpush3.bf16.msra.mxu0 %v689_v33  ;;  %v725_v54 = vpack.c.bf16 %v56_v45, %v55_v44  ;;  %v25_v56 = vld [vmem:[%s1295_s1 + $0x40] sm:$0xff]  ;;  %v26_v57 = vld [vmem:[%s1295_s1 + $0x48] sm:$0xff]  ;;  %v727_v59 = vpack.c.bf16 %v74_v53, %v73_v52  ;;  %v43_v61 = vld [vmem:[%s1295_s1 + $0xd0] sm:$0xff] }
   0xe   :  { %692 = vmatprep.subr.bf16.mxu0 %v691_v39  ;;  %v57_v58 = vld [vmem:[%s1295_s1 + $0x140] sm:$0xff]  ;;  %v58_v60 = vld [vmem:[%s1295_s1 + $0x148] sm:$0xff]  ;;  %v44_v62 = vld [vmem:[%s1295_s1 + $0xd8] sm:$0xff]  ;;  %v697_v3 = vpack.c.bf16 %v26_v57, %v25_v56 }
   0xf   :  { %722 = vmatpush3.bf16.msra.mxu1 %v721_v38  ;;  %v75_v1 = vld [vmem:[%s1295_s1 + $0x1d0] sm:$0xff]  ;;  %v76_v2 = vld [vmem:[%s1295_s1 + $0x1d8] sm:$0xff]  ;;  %v729_v4 = vpack.c.bf16 %v58_v60, %v57_v58  ;;  %v699_v5 = vpack.c.bf16 %v44_v62, %v43_v61  ;;  %v45_v11 = vld [vmem:[%s1295_s1 + $0xe0] sm:$0xff] }
  0x10   :  { %724 = vmatprep.subr.bf16.mxu1 %v723_v43  ;;  %v27_v6 = vld [vmem:[%s1295_s1 + $0x50] sm:$0xff]  ;;  %v28_v7 = vld [vmem:[%s1295_s1 + $0x58] sm:$0xff]  ;;  %v731_v9 = vpack.c.bf16 %v76_v2, %v75_v1  ;;  %v46_v12 = vld [vmem:[%s1295_s1 + $0xe8] sm:$0xff] }
  0x11   :  { %694 = vmatpush3.bf16.msra.mxu0 %v693_v51  ;;  %v59_v8 = vld [vmem:[%s1295_s1 + $0x150] sm:$0xff]  ;;  %v60_v10 = vld [vmem:[%s1295_s1 + $0x158] sm:$0xff]  ;;  %v77_v14 = vld [vmem:[%s1295_s1 + $0x1e0] sm:$0xff]  ;;  %v701_v16 = vpack.c.bf16 %v28_v7, %v27_v6  ;;  %v703_v19 = vpack.c.bf16 %v46_v12, %v45_v11 }
  0x12   :  { %696 = vmatprep.subr.bf16.mxu0 %v695_v55  ;;  %v78_v15 = vld [vmem:[%s1295_s1 + $0x1e8] sm:$0xff]  ;;  %v29_v17 = vld [vmem:[%s1295_s1 + $0x60] sm:$0xff]  ;;  %v733_v18 = vpack.c.bf16 %v60_v10, %v59_v8  ;;  %v47_v25 = vld [vmem:[%s1295_s1 + $0xf0] sm:$0xff] }
  0x13   :  { %726 = vmatpush3.bf16.msra.mxu1 %v725_v54  ;;  %v30_v20 = vld [vmem:[%s1295_s1 + $0x68] sm:$0xff]  ;;  %v61_v21 = vld [vmem:[%s1295_s1 + $0x160] sm:$0xff]  ;;  %v735_v23 = vpack.c.bf16 %v78_v15, %v77_v14  ;;  %v48_v26 = vld [vmem:[%s1295_s1 + $0xf8] sm:$0xff] }
  0x14   :  { %728 = vmatprep.subr.bf16.mxu1 %v727_v59  ;;  %v15_v22 = vld [vmem:[%s1294_s0] sm:$0xff]  ;;  %v62_v24 = vld [vmem:[%s1295_s1 + $0x168] sm:$0xff]  ;;  %v79_v29 = vld [vmem:[%s1295_s1 + $0x1f0] sm:$0xff]  ;;  %v705_v31 = vpack.c.bf16 %v30_v20, %v29_v17  ;;  %v707_v35 = vpack.c.bf16 %v48_v26, %v47_v25 }
  0x15   :  { %698 = vmatpush3.bf16.msra.mxu0 %v697_v3  ;;  %v161_v27 = vrot.slane %v15_v22, %v1023_v13  ;;  %v154_v28 = vcombine.high %v15_v22, %v15_v22  ;;  %v80_v30 = vld [vmem:[%s1295_s1 + $0x1f8] sm:$0xff]  ;;  %v737_v34 = vpack.c.bf16 %v62_v24, %v61_v21  ;;  %v31_v36 = vld [vmem:[%s1295_s1 + $0x70] sm:$0xff]  ;;  %v97_v41 = vld [vmem:[%s1295_s1 + $0x280] sm:$0xff] }
  0x16   :  { %700 = vmatprep.subr.bf16.mxu0 %v699_v5  ;;  %v32_v37 = vld [vmem:[%s1295_s1 + $0x78] sm:$0xff]  ;;  %v63_v38 = vld [vmem:[%s1295_s1 + $0x170] sm:$0xff]  ;;  %v739_v39 = vpack.c.bf16 %v80_v30, %v79_v29  ;;  %v98_v42 = vld [vmem:[%s1295_s1 + $0x288] sm:$0xff] }
  0x17   :  { %730 = vmatpush3.bf16.msra.mxu1 %v729_v4  ;;  %v169_v32 = vcombine.high %v161_v27, %v161_v27  ;;  %v168_v33 = vrot.slane %v154_v28, %v1023_v13  ;;  %v64_v40 = vld [vmem:[%s1295_s1 + $0x178] sm:$0xff]  ;;  %v129_v44 = vld [vmem:[%s1295_s1 + $0x380] sm:$0xff]  ;;  %v130_v45 = vld [vmem:[%s1295_s1 + $0x388] sm:$0xff]  ;;  %v709_v46 = vpack.c.bf16 %v32_v37, %v31_v36  ;;  %v743_v48 = vpack.c.bf16 %v98_v42, %v97_v41 }
  0x18   :  { %732 = vmatprep.subr.bf16.mxu1 %v731_v9  ;;  %v741_v47 = vpack.c.bf16 %v64_v40, %v63_v38  ;;  %v81_v50 = vld [vmem:[%s1295_s1 + $0x200] sm:$0xff]  ;;  %v82_v51 = vld [vmem:[%s1295_s1 + $0x208] sm:$0xff]  ;;  %v775_v53 = vpack.c.bf16 %v130_v45, %v129_v44  ;;  %v99_v55 = vld [vmem:[%s1295_s1 + $0x290] sm:$0xff] }
  0x19   :  { %702 = vmatpush3.bf16.msra.mxu0 %v701_v16  ;;  %260 = vmatprep.mubr.f32.mxu0 %v169_v32  ;;  %v170_v43 = vcombine.high %v168_v33, %v168_v33  ;;  %v113_v52 = vld [vmem:[%s1295_s1 + $0x300] sm:$0xff]  ;;  %v114_v54 = vld [vmem:[%s1295_s1 + $0x308] sm:$0xff]  ;;  %v100_v56 = vld [vmem:[%s1295_s1 + $0x298] sm:$0xff]  ;;  %v745_v59 = vpack.c.bf16 %v82_v51, %v81_v50 }
  0x1a   :  { %704 = vmatprep.subr.bf16.mxu0 %v703_v19  ;;  %v131_v57 = vld [vmem:[%s1295_s1 + $0x390] sm:$0xff]  ;;  %v132_v58 = vld [vmem:[%s1295_s1 + $0x398] sm:$0xff]  ;;  %v777_v60 = vpack.c.bf16 %v114_v54, %v113_v52  ;;  %v747_v61 = vpack.c.bf16 %v100_v56, %v99_v55  ;;  %v101_v3 = vld [vmem:[%s1295_s1 + $0x2a0] sm:$0xff] }
  0x1b   :  { %734 = vmatpush3.bf16.msra.mxu1 %v733_v18  ;;  %330 = vmatprep.mubr.f32.mxu1 %v170_v43  ;;  %v83_v62 = vld [vmem:[%s1295_s1 + $0x210] sm:$0xff]  ;;  %v84_v63 = vld [vmem:[%s1295_s1 + $0x218] sm:$0xff]  ;;  %v779_v1 = vpack.c.bf16 %v132_v58, %v131_v57  ;;  %v102_v4 = vld [vmem:[%s1295_s1 + $0x2a8] sm:$0xff] }
  0x1c   :  { %736 = vmatprep.subr.bf16.mxu1 %v735_v23  ;;  %v115_v0 = vld [vmem:[%s1295_s1 + $0x310] sm:$0xff]  ;;  %v116_v2 = vld [vmem:[%s1295_s1 + $0x318] sm:$0xff]  ;;  %v133_v5 = vld [vmem:[%s1295_s1 + $0x3a0] sm:$0xff]  ;;  %v749_v7 = vpack.c.bf16 %v84_v63, %v83_v62  ;;  %v751_v9 = vpack.c.bf16 %v102_v4, %v101_v3 }
  0x1d   :  { %706 = vmatpush3.bf16.msra.mxu0 %v705_v31  ;;  %v134_v6 = vld [vmem:[%s1295_s1 + $0x3a8] sm:$0xff]  ;;  %v781_v8 = vpack.c.bf16 %v116_v2, %v115_v0  ;;  %v85_v10 = vld [vmem:[%s1295_s1 + $0x220] sm:$0xff]  ;;  %v103_v16 = vld [vmem:[%s1295_s1 + $0x2b0] sm:$0xff] }
  0x1e   :  { %708 = vmatprep.subr.bf16.mxu0 %v707_v35  ;;  %v86_v11 = vld [vmem:[%s1295_s1 + $0x228] sm:$0xff]  ;;  %v117_v12 = vld [vmem:[%s1295_s1 + $0x320] sm:$0xff]  ;;  %v783_v14 = vpack.c.bf16 %v134_v6, %v133_v5  ;;  %v104_v17 = vld [vmem:[%s1295_s1 + $0x2b8] sm:$0xff] }
  0x1f   :  { %738 = vmatpush3.bf16.msra.mxu1 %v737_v34  ;;  %v118_v15 = vld [vmem:[%s1295_s1 + $0x328] sm:$0xff]  ;;  %v135_v18 = vld [vmem:[%s1295_s1 + $0x3b0] sm:$0xff]  ;;  %v136_v19 = vld [vmem:[%s1295_s1 + $0x3b8] sm:$0xff]  ;;  %v753_v20 = vpack.c.bf16 %v86_v11, %v85_v10  ;;  %v755_v23 = vpack.c.bf16 %v104_v17, %v103_v16 }
  0x20   :  { %740 = vmatprep.subr.bf16.mxu1 %v739_v39  ;;  %v87_v21 = vld [vmem:[%s1295_s1 + $0x230] sm:$0xff]  ;;  %v785_v22 = vpack.c.bf16 %v118_v15, %v117_v12  ;;  %v88_v24 = vld [vmem:[%s1295_s1 + $0x238] sm:$0xff]  ;;  %v105_v28 = vld [vmem:[%s1295_s1 + $0x2c0] sm:$0xff] }
  0x21   :  { %710 = vmatpush3.bf16.msra.mxu0 %v709_v46  ;;  %v119_v25 = vld [vmem:[%s1295_s1 + $0x330] sm:$0xff]  ;;  %v120_v26 = vld [vmem:[%s1295_s1 + $0x338] sm:$0xff]  ;;  %v106_v29 = vld [vmem:[%s1295_s1 + $0x2c8] sm:$0xff] }
  0x22   :  { %744 = vmatprep.subr.bf16.mxu0 %v743_v48  ;;  %v137_v30 = vld [vmem:[%s1295_s1 + $0x3c0] sm:$0xff]  ;;  %v138_v31 = vld [vmem:[%s1295_s1 + $0x3c8] sm:$0xff] }
  0x23   :  { %742 = vmatpush3.bf16.msra.mxu1 %v741_v47  ;;  %v16_v32 = vld [vmem:[%s1294_s0 + $0x8] sm:$0xff] }
  0x24   :  { %776 = vmatprep.subr.bf16.mxu1 %v775_v53  ;;  %261 = vmatmul.mubr.f32.vlgmr.msra.gmra.mrb[0].mxu0 %v161_v27  ;;  %v787_v27 = vpack.c.bf16 %v136_v19, %v135_v18 }
  0x25   :  { %746 = vmatpush3.bf16.msra.mxu0 %v745_v59 }
  0x26   :  { %331 = vmatmul.mubr.f32.vlgmr.msra.gmra.mrb[0].mxu1 %v168_v33  ;;  %748 = vmatprep.subr.bf16.mxu0 %v747_v61 }
  0x27   :  { %778 = vmatpush3.bf16.msra.mxu1 %v777_v60 }
  0x28   :  { %780 = vmatprep.subr.bf16.mxu1 %v779_v1 }
  0x29   :  { %750 = vmatpush3.bf16.msra.mxu0 %v749_v7 }
  0x2a   :  { %752 = vmatprep.subr.bf16.mxu0 %v751_v9 }
  0x2b   :  { %782 = vmatpush3.bf16.msra.mxu1 %v781_v8 }
  0x2c   :  { %784 = vmatprep.subr.bf16.mxu1 %v783_v14 }
  0x2d   :  { %8 = vsyncpa [#allocation3], 0  ;;  %754 = vmatpush3.bf16.msra.mxu0 %v753_v20  ;;  %v757_v33 = vpack.c.bf16 %v88_v24, %v87_v21  ;;  %v1184_v34 = vrot.slane %v16_v32, %v1023_v13  ;;  %v171_v35 = vcombine.high %v16_v32, %v16_v32  ;;  %v789_v36 = vpack.c.bf16 %v120_v26, %v119_v25  ;;  %v89_v38 = vld [vmem:[%s1295_s1 + $0x240] sm:$0xff]  ;;  %v90_v39 = vld [vmem:[%s1295_s1 + $0x248] sm:$0xff]  ;;  %s851_s29 = smov [#allocation2]  }
  0x2e   :  { %756 = vmatprep.subr.bf16.mxu0 %v755_v23  ;;  %v759_v37 = vpack.c.bf16 %v106_v29, %v105_v28  ;;  %v121_v40 = vld [vmem:[%s1295_s1 + $0x340] sm:$0xff]  ;;  %v791_v41 = vpack.c.bf16 %v138_v31, %v137_v30  ;;  %v122_v42 = vld [vmem:[%s1295_s1 + $0x348] sm:$0xff]  ;;  %v107_v43 = vld [vmem:[%s1295_s1 + $0x2d0] sm:$0xff]  ;;  %v761_v50 = vpack.c.bf16 %v90_v39, %v89_v38  ;;  %vm476_vm0 = vcmask 58368   ;;  %s530_s30 = sshll.u32 %s851_s29, 4  ;;  %s531_s30 = int_to_ptr.vmem [resolvable:$true] %s530_s30 }
  0x2f   :  { %786 = vmatpush3.bf16.msra.mxu1 %v785_v22  ;;  %v108_v44 = vld [vmem:[%s1295_s1 + $0x2d8] sm:$0xff]  ;;  %v186_v45 = vcombine.high %v1184_v34, %v1184_v34  ;;  %v185_v46 = vrot.slane %v171_v35, %v1023_v13  ;;  %v139_v47 = vld [vmem:[%s1295_s1 + $0x3d0] sm:$0xff]  ;;  %v793_v52 = vpack.c.bf16 %v122_v42, %v121_v40  ;;  %v109_v58 = vld [vmem:[%s1295_s1 + $0x2e0] sm:$0xff]  ;;  %vm488_vm1 = vcmask 123968   ;;  %s823_s0 = scalar_lea.vmem %s531_s30, 32  ;;  %p828_p1 = scmp.lt.s32.totalorder %s531_s30, %s531_s30 }
  0x30   :  { %788 = vmatprep.subr.bf16.mxu1 %v787_v27  ;;  %v140_v48 = vld [vmem:[%s1295_s1 + $0x3d8] sm:$0xff]  ;;  %v763_v53 = vpack.c.bf16 %v108_v44, %v107_v43  ;;  %v91_v13 = vld [vmem:[%s1295_s1 + $0x250] sm:$0xff]  ;;  %v110_v59 = vld [vmem:[%s1295_s1 + $0x2e8] sm:$0xff]  ;;  %p824_p0 = scmp.ne.s32.totalorder %s531_s30, %s823_s0  ;;  %p829_p2 = scmp.lt.s32.totalorder %s823_s0, %s823_s0 }
  0x31   :  { %758 = vmatpush3.bf16.msra.mxu0 %v757_v33  ;;  %400 = vmatprep.mubr.f32.mxu0 %v186_v45  ;;  %v187_v51 = vcombine.high %v185_v46, %v185_v46  ;;  %v92_v54 = vld [vmem:[%s1295_s1 + $0x258] sm:$0xff]  ;;  %v123_v55 = vld [vmem:[%s1295_s1 + $0x350] sm:$0xff]  ;;  %v795_v56 = vpack.c.bf16 %v140_v48, %v139_v47  ;;  %v141_v60 = vld [vmem:[%s1295_s1 + $0x3e0] sm:$0xff]  ;;  %v767_v0 = vpack.c.bf16 %v110_v59, %v109_v58 }
  0x32   :  { %760 = vmatprep.subr.bf16.mxu0 %v759_v37  ;;  %v124_v57 = vld [vmem:[%s1295_s1 + $0x358] sm:$0xff]  ;;  %v142_v61 = vld [vmem:[%s1295_s1 + $0x3e8] sm:$0xff]  ;;  %v765_v62 = vpack.c.bf16 %v92_v54, %v91_v13  ;;  %v93_v1 = vld [vmem:[%s1295_s1 + $0x260] sm:$0xff]  ;;  %p830_p3 = por %p829_p2, %p828_p1 }
  0x33   :  { %790 = vmatpush3.bf16.msra.mxu1 %v789_v36  ;;  %470 = vmatprep.mubr.f32.mxu1 %v187_v51  ;;  %v797_v63 = vpack.c.bf16 %v124_v57, %v123_v55  ;;  %v94_v2 = vld [vmem:[%s1295_s1 + $0x268] sm:$0xff]  ;;  %v125_v3 = vld [vmem:[%s1295_s1 + $0x360] sm:$0xff]  ;;  %v799_v4 = vpack.c.bf16 %v142_v61, %v141_v60  ;;  %v111_v6 = vld [vmem:[%s1295_s1 + $0x2f0] sm:$0xff] }
  0x34   :  { %792 = vmatprep.subr.bf16.mxu1 %v791_v41  ;;  %v126_v5 = vld [vmem:[%s1295_s1 + $0x368] sm:$0xff]  ;;  %v112_v7 = vld [vmem:[%s1295_s1 + $0x2f8] sm:$0xff]  ;;  %v143_v8 = vld [vmem:[%s1295_s1 + $0x3f0] sm:$0xff]  ;;  %v769_v10 = vpack.c.bf16 %v94_v2, %v93_v1  ;;  %p831_p4 = pnand %p830_p3, %p824_p0 }
  0x35   :  { %762 = vmatpush3.bf16.msra.mxu0 %v761_v50  ;;  %v144_v9 = vld [vmem:[%s1295_s1 + $0x3f8] sm:$0xff]  ;;  %v801_v11 = vpack.c.bf16 %v126_v5, %v125_v3  ;;  %v771_v12 = vpack.c.bf16 %v112_v7, %v111_v6  ;;  %v95_v14 = vld [vmem:[%s1295_s1 + $0x270] sm:$0xff]  ;;  %v538_v22 = vld [vmem:[%s1296_s2] ss:$0 sm:$0xff]  ;;  %v849_v50 = vmov 1   ;;  %s850_s2 = smov 8  }
  0x36   :  { %764 = vmatprep.subr.bf16.mxu0 %v763_v53  ;;  %v96_v15 = vld [vmem:[%s1295_s1 + $0x278] sm:$0xff]  ;;  %v803_v16 = vpack.c.bf16 %v144_v9, %v143_v8  ;;  %v127_v17 = vld [vmem:[%s1295_s1 + $0x370] sm:$0xff]  ;;  %812 = vset.pattern.permute.xlu0 %v849_v50 }
  0x37   :  { %794 = vmatpush3.bf16.msra.mxu1 %v793_v52  ;;  %v128_v18 = vld [vmem:[%s1295_s1 + $0x378] sm:$0xff]  ;;  %v773_v19 = vpack.c.bf16 %v96_v15, %v95_v14  ;;  %s848_s1 = smov 120  }
  0x38   :  { %796 = vmatprep.subr.bf16.mxu1 %v795_v56  ;;  %v805_v20 = vpack.c.bf16 %v128_v18, %v127_v17  ;;  %v505_v56 = vand.u32 127, %v158_v49 }
  0x39   :  { %766 = vmatpush3.bf16.msra.mxu0 %v765_v62 }
  0x3a   :  { %768 = vmatprep.subr.bf16.mxu0 %v767_v0  ;;  %vm506_vm2 = vcmp.eq.s32.totalorder %v505_v56, 0 }
  0x3b   :  { %798 = vmatpush3.bf16.msra.mxu1 %v797_v63 }
  0x3c   :  { %800 = vmatprep.subr.bf16.mxu1 %v799_v4 }
  0x3d   :  { %770 = vmatpush3.bf16.msra.mxu0 %v769_v10 }
  0x3e   :  { %772 = vmatprep.subr.bf16.mxu0 %v771_v12 }
  0x3f   :  { %802 = vmatpush3.bf16.msra.mxu1 %v801_v11 }
  0x40   :  { %804 = vmatprep.subr.bf16.mxu1 %v803_v16 }
  0x41   :  { %774 = vmatpush3.bf16.msra.mxu0 %v773_v19 }
  0x43   :  { %806 = vmatpush3.bf16.msra.mxu1 %v805_v20 }
  0x44   :  { %401 = vmatmul.mubr.f32.vlgmr.msra.gmra.mrb[2].mxu0 %v1184_v34 }
  0x46   :  { %471 = vmatmul.mubr.f32.vlgmr.msra.gmra.mrb[2].mxu1 %v185_v46 }
  0xf7   :  { %v571_v21 = vpop.f32.mrb[0].mxu0 }
  0xf8   :  { %v572_v23 = vpop.f32.mrb[1].mxu0 }
  0xf9   :  { %v606_v24 = vpop.f32.mrb[0].mxu1  ;;  %v573_v25 = vadd.f32 %v572_v23, %v571_v21 }
  0xfa   :  { %v607_v26 = vpop.f32.mrb[1].mxu1 }
  0xfb   :  { %v608_v27 = vadd.f32 %v607_v26, %v606_v24  ;;  %v263_v28 = vadd.f32 %v573_v25, %v538_v22 }
  0xfd   :  { %v333_v29 = vadd.f32 %v608_v27, %v263_v28 }
 0x117   :  { %v641_v30 = vpop.f32.mrb[2].mxu0 }
 0x118   :  { %v642_v31 = vpop.f32.mrb[3].mxu0 }
 0x119   :  { %v676_v32 = vpop.f32.mrb[2].mxu1  ;;  %v643_v33 = vadd.f32 %v642_v31, %v641_v30 }
 0x11a   :  { %v677_v35 = vpop.f32.mrb[3].mxu1 }
 0x11b   :  { %v678_v36 = vadd.f32 %v677_v35, %v676_v32  ;;  %v403_v34 = vadd.f32 %v643_v33, %v333_v29 }
 0x11d   :  { %v473_v37 = vadd.f32 %v678_v36, %v403_v34 }
 0x11f   :  { %v477_v38 = vsel %vm476_vm0, %v473_v37, -inf  ;;  %v489_v39 = vsel %vm488_vm1, %v473_v37, -inf }
 0x120   :  { %478 = vmax.xlane.f32.xlu0 %v477_v38 }
 0x124   :  { %490 = vmax.xlane.f32.xlu0 %v489_v39 }
 0x1ad   :  { %v479_v40 = vpop.xlane.xlu0 %478 }
 0x1ae   :  { %v480_v41 = vsub.f32 %v473_v37, %v479_v40 }
 0x1b0   :  { %v481_v42 = vmul.f32 1.442695, %v480_v41 }
 0x1b1   :  { %v491_v43 = vpop.xlane.xlu0 %490 }
 0x1b2   :  { %815 = vpow2.f32 %v481_v42  ;;  %v492_v45 = vsub.f32 %v473_v37, %v491_v43 }
 0x1b4   :  { %v493_v47 = vmul.f32 1.442695, %v492_v45 }
 0x1b6   :  { %817 = vpow2.f32 %v493_v47 }
 0x1bc   :  { %v816_v44 = vpop.eup %815 }
 0x1bd   :  { %v483_v46 = vsel %vm476_vm0, %v816_v44, 0.0 }
 0x1be   :  { %484 = vadd.xlane.f32.xlu1 %v483_v46 }
 0x1c0   :  { %v818_v48 = vpop.eup %817 }
 0x1cf   :  { %496 = vrot.lane.b32.xlu1 %v818_v48, %s848_s1 }
 0x24b   :  { %v485_v51 = vpop.xlane.xlu1 %484 }
 0x24c   :  { %819 = vrcp.f32 %v485_v51 }
 0x24f   :  { %v497_v52 = vpop.permute.xlu1 %496 }
 0x250   :  { %v499_v53 = vsel %vm476_vm0, %v497_v52, 0.0 }
 0x251   :  { %500 = vadd.xlane.f32.xlu1 %v499_v53 }
 0x256   :  { %v820_v13 = vpop.eup %819 }
 0x257   :  { %v487_v54 = vmul.f32 %v820_v13, %v816_v44 }
 0x259   :  { %v507_v55 = vmul.f32 1.5, %v487_v54 }
 0x25b   :  { %510 = vperm.xlu0 %812, %v507_v55  }
 0x2da   :  { %v511_v57 = vpop.permute.xlu0 %510 }
 0x2db   :  { %v513_v58 = vsel %vm506_vm2, %v511_v57, 0.0 }
 0x2dc   :  { %515 = vrot.lane.b32.xlu0 %v513_v58, %s850_s2 }
 0x2de   :  { %v501_v59 = vpop.xlane.xlu1 %500 }
 0x2df   :  { %821 = vrcp.f32 %v501_v59 }
 0x2e9   :  { %v822_v60 = vpop.eup %821 }
 0x2ea   :  { %v503_v61 = vmul.f32 %v822_v60, %v818_v48 }
 0x34e   :  { %v516_v62 = vpop.permute.xlu0 %515 }
 0x34f   :  { %v518_v63 = vadd.f32 %v516_v62, %v503_v61 }
 0x351   :  { %520 = vrot.lane.b32.xlu0 %v518_v63, %s848_s1 }
 0x3c3   :  { %v521_v0 = vpop.permute.xlu0 %520 }
 0x3c4   :  { %523 = vst.msk [vmem:[#allocation2] sm:$0x3] %vm476_vm0, %v521_v0 }
 0x3c5   :  { %834 = shalt.err (!%p831_p4)
}
 0x3c6   :  { %s835_s6 = scalar_lea.hbm %s1297_s3, 32 }
 0x3c7   :  { %p836_p5 = scmp.ne.s32.totalorder %s1297_s3, %s835_s6  ;;  %p839_p6 = scmp.lt.u32.totalorder %s835_s6, %s1297_s3 }
 0x3c9   :  { %p841_p7 = pnand %p839_p6, %p836_p5 }
 0x3cb   :  { %844 = shalt.err (!%p841_p7)
}
 0x3cc   :  { %533 = dma.vmem_to_hbm [thread:$0]  %s531_s30, 32, %s1297_s3, [#allocation3]  }
 0x3cd   :  { %845 = dma.done.wait [#allocation3], 32  }
 0x3ce   :  { %846 = vsyncadd [#allocation3], 4294967264 }
 0x3cf   :  { %537 = vsyncpa [#allocation3], 1 }

</bundles_post_ra>
